<compile_context>
chip_gen: v5e
topology: v5e:2x2
jax: 0.10.0
libtpu: 0.0.40
codegen_flags: <defaults>
</compile_context>

<pallas_src>
import functools

import jax
import jax.numpy as jnp
from jax import lax
from jax.experimental import pallas as pl
from jax.experimental.pallas import tpu as pltpu

_MM_DTYPE = jnp.bfloat16   # MXU-native operand dtype for all dots (f32 accumulate)


def _sigmoid(x):
    # sigmoid(x) = 0.5*tanh(0.5*x) + 0.5 : 1 EUP push instead of exp + reciprocal (2).
    return 0.5 * jnp.tanh(0.5 * x) + 0.5


# ------------------------- Fused bidirectional LSTM layer -------------------------

def _bilstm_layer_kernel(x_ref, wih_ref, whh_ref, b_ref,
                         hseq_ref, hfinal_ref,
                         gx_sc, h_sc, c_sc, *, hidden, batch, unroll):
    """One bidirectional LSTM layer, grid=(2, T//Tc): (direction d, time-chunk c).

    x_ref:      (n_in, Tc*B, Din)  this chunk of the layer input (n_in=1 for the
                                   embeddings, 2 for the previous layer's fwd/bwd
                                   hidden slabs -> replaces the torch concat)
    wih_ref:    (n_in*Din, 4H)     this direction's input->gates weights [i,f,g,o]
    whh_ref:    (H, 4H)            this direction's hidden->gates weights
    b_ref:      (1, 4H)            combined bias (b_ih + b_hh)
    hseq_ref:   (Tc*B, H)          this direction's chunk of the (2, T*B, H) output
    hfinal_ref: (B, H)             this direction's final hidden state
    gx_sc:      (Tc*B, 4H)         VMEM scratch: this chunk's input-to-gates
    h_sc, c_sc: (B, H)             VMEM scratch: recurrence carry (persists over chunks)
    """
    d = pl.program_id(0)
    c = pl.program_id(1)
    nc = pl.num_programs(1)
    n_in, rows, din = x_ref.shape
    tc = rows // batch
    H = hidden

    @pl.when(c == 0)
    def _():
        h_sc[...] = jnp.zeros_like(h_sc)
        c_sc[...] = jnp.zeros_like(c_sc)

    # --- hoisted input-to-gates for this chunk: one MXU matmul per input slab ---
    # TODO(synk): when H is a multiple of 128, emit hseq with direction on the feature
    # axis so this becomes a single (Tc*B, 2H)@(2H, 4H) dot instead of two dots + add.
    acc = jnp.dot(x_ref[0].astype(_MM_DTYPE),
                  wih_ref[0:din, :].astype(_MM_DTYPE),
                  preferred_element_type=jnp.float32)
    for k in range(1, n_in):
        acc = acc + jnp.dot(x_ref[k].astype(_MM_DTYPE),
                            wih_ref[k * din:(k + 1) * din, :].astype(_MM_DTYPE),
                            preferred_element_type=jnp.float32)
    gx_sc[...] = acc + b_ref[...]

    whh = whh_ref[...].astype(_MM_DTYPE)      # hoisted out of the loop
    last = tc - 1

    def step(t, carry):
        # Forward (d==0) walks the chunk forwards; backward (d==1) gets chunks in
        # reversed order from the index_map and walks each chunk backwards, so rows
        # land in forward time order in the output block.
        idx = jnp.where(d == 0, t, last - t)
        r0 = pl.multiple_of(idx * batch, batch)
        gates = gx_sc[pl.ds(r0, batch), :] + jnp.dot(
            h_sc[...].astype(_MM_DTYPE), whh, preferred_element_type=jnp.float32)
        # TODO(synk): pad H to a multiple of 128 (or 128-align each gate's columns)
        # so these slices / the hseq stores are unmasked full-vreg ops.
        i = _sigmoid(gates[:, 0 * H:1 * H])
        f = _sigmoid(gates[:, 1 * H:2 * H])
        g = jnp.tanh(gates[:, 2 * H:3 * H])
        o = _sigmoid(gates[:, 3 * H:4 * H])
        cst = f * c_sc[...] + i * g
        h = o * jnp.tanh(cst)
        c_sc[...] = cst
        h_sc[...] = h
        hseq_ref[pl.ds(r0, batch), :] = h
        return carry

    lax.fori_loop(0, tc, step, 0, unroll=min(unroll, tc))

    @pl.when(c == nc - 1)
    def _():
        hfinal_ref[...] = h_sc[...]


def _pick_time_chunk(T, B, in_width, hidden, requested=None,
                     chunk_budget_bytes=4 << 20):
    """Largest divisor Tc of T whose (Tc*B) rows keep the chunk under budget and
    satisfy the (8,128) block rule (Tc*B % 8 == 0, unless Tc == T)."""
    valid = [t for t in range(1, T + 1)
             if T % t == 0 and (t == T or (t * B) % 8 == 0)]
    if requested is not None:
        if T % requested != 0 or (requested != T and (requested * B) % 8 != 0):
            raise ValueError(f"invalid time_chunk={requested} for T={T}, B={B}")
        return requested

    def chunk_bytes(t):
        rows = t * B
        # x (dbl-buffered) + hseq (dbl-buffered) + gx scratch, all f32
        return 4 * rows * (2 * in_width + 2 * hidden + 4 * hidden)

    fitting = [t for t in valid if chunk_bytes(t) <= chunk_budget_bytes]
    return max(fitting) if fitting else min(valid)


def _vmem_limit_bytes(n_in, chunk_rows, din, hidden, batch):
    f32 = 4
    need = (2 * n_in * chunk_rows * din * f32            # x chunk, double-buffered
            + 2 * chunk_rows * hidden * f32              # hseq chunk, double-buffered
            + chunk_rows * 4 * hidden * f32              # gx scratch
            + 2 * (n_in * din + hidden + 1) * 4 * hidden * f32   # weights + bias
            + 4 * batch * hidden * f32)                  # h/c scratch + hfinal
    # generous headroom for compiler temporaries; stay within the 64 MiB v7x TC.
    return int(min(max(4 * need, 32 << 20), 100 << 20))


def bilstm_layer(x, w_ih, w_hh, b, hidden, *, seq_len, batch,
                 time_chunk=None, unroll=8):
    """x: (n_in, T*B, Din) sublane-dense. Returns hseq (2, T*B, H), hfinal (2, B, H)."""
    n_in, rows, din = x.shape
    T, B = seq_len, batch
    assert rows == T * B
    tc = _pick_time_chunk(T, B, n_in * din, hidden, time_chunk)
    nc = T // tc
    chunk_rows = tc * B

    def rev(d, c):      # chunk order reversed for the backward direction
        return c * (1 - d) + (nc - 1 - c) * d

    kernel = functools.partial(_bilstm_layer_kernel, hidden=hidden, batch=B,
                               unroll=unroll)
    return pl.pallas_call(
        kernel,
        grid=(2, nc),
        out_shape=(jax.ShapeDtypeStruct((2, T * B, hidden), jnp.float32),
                   jax.ShapeDtypeStruct((2, B, hidden), jnp.float32)),
        in_specs=[
            pl.BlockSpec((n_in, chunk_rows, din), lambda d, c: (0, rev(d, c), 0)),
            pl.BlockSpec((None, n_in * din, 4 * hidden), lambda d, c: (d, 0, 0)),
            pl.BlockSpec((None, hidden, 4 * hidden), lambda d, c: (d, 0, 0)),
            pl.BlockSpec((None, 1, 4 * hidden), lambda d, c: (d, 0, 0)),
        ],
        out_specs=(
            pl.BlockSpec((None, chunk_rows, hidden), lambda d, c: (d, rev(d, c), 0)),
            pl.BlockSpec((None, B, hidden), lambda d, c: (d, 0, 0)),
        ),
        scratch_shapes=[
            pltpu.VMEM((chunk_rows, 4 * hidden), jnp.float32),
            pltpu.VMEM((B, hidden), jnp.float32),
            pltpu.VMEM((B, hidden), jnp.float32),
        ],
        compiler_params=pltpu.CompilerParams(
            # v7x: one direction per TensorCore; time chunks pipelined sequentially.
            dimension_semantics=("parallel", "arbitrary"),
            vmem_limit_bytes=_vmem_limit_bytes(n_in, chunk_rows, din, hidden, B)),
    )(x, w_ih, w_hh, b)


# ------------------------------- Fused MLP head ---------------------------------

def _head_kernel(hf_ref, w1_ref, b1_ref, w2_ref, b2_ref, w3_ref, b3_ref,
                 out_ref, *, hidden):
    # torch.cat((hidden[-2], hidden[-1]), dim=1) @ W1 fused as two matmuls on the
    # split W1 -> no (B, 2H) concat materialization / extra HBM round trip.
    h1 = (jnp.dot(hf_ref[0], w1_ref[0:hidden, :],
                  preferred_element_type=jnp.float32)
          + jnp.dot(hf_ref[1], w1_ref[hidden:2 * hidden, :],
                    preferred_element_type=jnp.float32)
          + b1_ref[...])
    h1 = jnp.maximum(h1, 0.0)
    h2 = jnp.maximum(
        jnp.dot(h1, w2_ref[...], preferred_element_type=jnp.float32) + b2_ref[...],
        0.0)
    out_ref[...] = (jnp.dot(h2, w3_ref[...], preferred_element_type=jnp.float32)
                    + b3_ref[...])


def mlp_head(hfinal, w1, b1, w2, b2, w3, b3, hidden):
    # TODO(synk): fuse into the last LSTM layer's epilogue; needs both directions'
    # finals in one program, which conflicts with the "parallel" direction axis.
    B = hfinal.shape[1]
    out_dim = w3.shape[1]
    kernel = functools.partial(_head_kernel, hidden=hidden)
    return pl.pallas_call(
        kernel,
        out_shape=jax.ShapeDtypeStruct((B, out_dim), jnp.float32),
        in_specs=[pl.BlockSpec(memory_space=pltpu.MemorySpace.VMEM)] * 7,
        out_specs=pl.BlockSpec(memory_space=pltpu.MemorySpace.VMEM),
    )(hfinal, w1, b1, w2, b2, w3, b3)


# ------------------------------- Full forward -----------------------------------

def rnn_lstm_forward(input_ids, params, *, hidden_dim, num_layers=2,
                     bidirectional=True, time_chunk=None):
    assert bidirectional, "kernel implements the bidirectional config of RNN_LSTM"
    T, B = input_ids.shape
    # Embedding lookup (gather) kept as JAX glue; dropout is identity at inference.
    # TODO(synk): optionally move the gather into layer 0 via PrefetchScalarGridSpec.
    x = jnp.take(params['embedding'], input_ids.reshape(-1), axis=0)   # (T*B, E)
    layer_in = x[None]                                                 # (1, T*B, E)
    hfin = None
    for layer in range(num_layers):
        hseq, hfin = bilstm_layer(layer_in,
                                  params[f'w_ih_l{layer}'],
                                  params[f'w_hh_l{layer}'],
                                  params[f'b_l{layer}'],
                                  hidden_dim, seq_len=T, batch=B,
                                  time_chunk=time_chunk)
        layer_in = hseq   # (2, T*B, H): next layer reads both direction slabs directly

    # hidden[-2]/hidden[-1] == last layer's fwd/bwd final states == hfin[0]/hfin[1].
    logits = mlp_head(hfin, params['w1'], params['b1'], params['w2'],
                      params['b2'], params['w3'], params['b3'], hidden_dim)
    # TODO(synk): loss computation (CrossEntropy/Huber/MSE/Smooth) when labels are
    # provided is not ported; only logits are produced.
    return logits


# ------------------------------ Parameter init ----------------------------------

def init_params(key, vocab, emb_dim, hidden, num_layers, fc1, fc2, out_dim, pad_idx):
    keys = jax.random.split(key, 64)
    ki = iter(keys)
    p = {}

    emb = jax.random.normal(next(ki), (vocab, emb_dim), jnp.float32) * 0.1
    emb = emb.at[pad_idx].set(0.0)          # nn.Embedding padding_idx row is zero
    p['embedding'] = emb

    k = 1.0 / (hidden ** 0.5)
    for layer in range(num_layers):
        din = emb_dim if layer == 0 else 2 * hidden
        # Per-direction weights stacked on a leading axis [fwd, bwd]; gate order
        # [i,f,g,o]; pre-transposed to (Din,4H)/(H,4H); bias is combined b_ih + b_hh.
        p[f'w_ih_l{layer}'] = jax.random.uniform(
            next(ki), (2, din, 4 * hidden), jnp.float32, -k, k)
        p[f'w_hh_l{layer}'] = jax.random.uniform(
            next(ki), (2, hidden, 4 * hidden), jnp.float32, -k, k)
        p[f'b_l{layer}'] = jax.random.uniform(
            next(ki), (2, 1, 4 * hidden), jnp.float32, -k, k)

    def lin(kk, fan_in, fan_out):
        bound = 1.0 / (fan_in ** 0.5)
        k1, k2 = jax.random.split(kk)
        w = jax.random.uniform(k1, (fan_in, fan_out), jnp.float32, -bound, bound)
        b = jax.random.uniform(k2, (1, fan_out), jnp.float32, -bound, bound)
        return w, b

    # NOTE: fc1 fan_in follows PyTorch's `num_neurons = lstm_hidden * num_layers`,
    # which matches the 2H head input only for num_layers == 2 (as in the reference).
    p['w1'], p['b1'] = lin(next(ki), hidden * num_layers, fc1)
    p['w2'], p['b2'] = lin(next(ki), fc1, fc2)
    p['w3'], p['b3'] = lin(next(ki), fc2, out_dim)
    return p


if __name__ == "__main__":
    vocab, emb_dim, hidden = 100, 32, 32
    num_layers = 2
    fc1, fc2, out_dim = 128, 64, 4
    pad_idx = 0
    T, B = 8, 2  # seq len, batch (time-major, matching nn.LSTM batch_first=False)

    key = jax.random.PRNGKey(0)
    kp, kx = jax.random.split(key)
    params = init_params(kp, vocab, emb_dim, hidden, num_layers,
                         fc1, fc2, out_dim, pad_idx)
    input_ids = jax.random.randint(kx, (T, B), 0, vocab)

    # time_chunk=4 -> two pipelined chunks per direction (exercises the chunked path).
    logits = rnn_lstm_forward(input_ids, params, hidden_dim=hidden,
                              num_layers=num_layers, bidirectional=True,
                              time_chunk=4)
    jax.block_until_ready(logits)
    assert logits.shape == (B, out_dim)
    assert logits.dtype == jnp.float32
    print("KERNEL_OK")
</pallas_src>

<mosaic_0001>
module attributes {stable_mosaic.version = 11 : i64} {
  func.func @_bilstm_layer_kernel(%arg0: i32, %arg1: i32, %arg2: memref<1x8x32xf32, #tpu.memory_space<vmem>>, %arg3: memref<1x32x128xf32, #tpu.memory_space<vmem>>, %arg4: memref<1x32x128xf32, #tpu.memory_space<vmem>>, %arg5: memref<1x1x128xf32, #tpu.memory_space<vmem>>, %arg6: memref<1x8x32xf32, #tpu.memory_space<vmem>>, %arg7: memref<1x2x32xf32, #tpu.memory_space<vmem>>, %arg8: memref<8x128xf32, #tpu.memory_space<vmem>>, %arg9: memref<2x32xf32, #tpu.memory_space<vmem>>, %arg10: memref<2x32xf32, #tpu.memory_space<vmem>>) attributes {dimension_semantics = [#tpu.dimension_semantics<parallel>, #tpu.dimension_semantics<arbitrary>], iteration_bounds = array<i64: 2, 2>, scalar_prefetch = 0 : i64, scratch_operands = 3 : i64, tpu.core_type = #tpu.core_type<tc>, window_params = [{transform_indices = @transform_0, window_bounds = array<i64: 1, 8, 32>}, {transform_indices = @transform_1, window_bounds = array<i64: 1, 32, 128>}, {transform_indices = @transform_2, window_bounds = array<i64: 1, 32, 128>}, {transform_indices = @transform_3, window_bounds = array<i64: 1, 1, 128>}, {transform_indices = @transform_4, window_bounds = array<i64: 1, 8, 32>}, {transform_indices = @transform_5, window_bounds = array<i64: 1, 2, 32>}]} {
    %c0_i32 = arith.constant 0 : i32
    %0 = arith.cmpi eq, %arg1, %c0_i32 : i32
    %1 = arith.extui %0 : i1 to i32
    %c0_i32_0 = arith.constant 0 : i32
    %2 = arith.cmpi ne, %1, %c0_i32_0 : i32
    scf.if %2 {
      %cst_113 = arith.constant 0.000000e+00 : f32
      %217 = vector.broadcast %cst_113 : f32 to vector<2x32xf32>
      %c0_114 = arith.constant 0 : index
      %c0_115 = arith.constant 0 : index
      %218 = vector.load %arg9[%c0_114, %c0_115] : memref<2x32xf32, #tpu.memory_space<vmem>>, vector<2x32xf32>
      tpu.vector_store %arg9[%c0_114, %c0_115], %217 {strides = array<i32>} : memref<2x32xf32, #tpu.memory_space<vmem>>, vector<2x32xf32>,
      %cst_116 = arith.constant 0.000000e+00 : f32
      %219 = vector.broadcast %cst_116 : f32 to vector<2x32xf32>
      %c0_117 = arith.constant 0 : index
      %c0_118 = arith.constant 0 : index
      %220 = vector.load %arg10[%c0_117, %c0_118] : memref<2x32xf32, #tpu.memory_space<vmem>>, vector<2x32xf32>
      tpu.vector_store %arg10[%c0_117, %c0_118], %219 {strides = array<i32>} : memref<2x32xf32, #tpu.memory_space<vmem>>, vector<2x32xf32>,
    } else {
    }
    %c0 = arith.constant 0 : index
    %c0_1 = arith.constant 0 : index
    %c0_2 = arith.constant 0 : index
    %3 = vector.load %arg2[%c0, %c0_1, %c0_2] : memref<1x8x32xf32, #tpu.memory_space<vmem>>, vector<1x8x32xf32>
    %4 = vector.shape_cast %3 : vector<1x8x32xf32> to vector<8x32xf32>
    %5 = arith.truncf %4 : vector<8x32xf32> to vector<8x32xbf16>
    %c0_3 = arith.constant 0 : index
    %c0_4 = arith.constant 0 : index
    %c0_5 = arith.constant 0 : index
    %6 = vector.load %arg3[%c0_3, %c0_4, %c0_5] : memref<1x32x128xf32, #tpu.memory_space<vmem>>, vector<1x32x128xf32>
    %7 = vector.shape_cast %6 : vector<1x32x128xf32> to vector<32x128xf32>
    %8 = arith.truncf %7 : vector<32x128xf32> to vector<32x128xbf16>
    %cst = arith.constant dense<0.000000e+00> : vector<8x128xf32>
    %9 = tpu.matmul %5, %8, %cst {dimension_numbers = #tpu.dot_dimension_numbers<[1], [0], [0], [1], [0, 0, 1, 1], [], []>} : vector<8x32xbf16>, vector<32x128xbf16>, vector<8x128xf32> -> vector<8x128xf32>
    %c0_6 = arith.constant 0 : index
    %c0_7 = arith.constant 0 : index
    %c0_8 = arith.constant 0 : index
    %10 = vector.load %arg5[%c0_6, %c0_7, %c0_8] : memref<1x1x128xf32, #tpu.memory_space<vmem>>, vector<1x1x128xf32>
    %11 = vector.shape_cast %10 : vector<1x1x128xf32> to vector<1x128xf32>
    %12 = vector.broadcast %11 : vector<1x128xf32> to vector<8x128xf32>
    %13 = arith.addf %9, %12 : vector<8x128xf32>
    %c0_9 = arith.constant 0 : index
    %c0_10 = arith.constant 0 : index
    %14 = vector.load %arg8[%c0_9, %c0_10] : memref<8x128xf32, #tpu.memory_space<vmem>>, vector<8x128xf32>
    tpu.vector_store %arg8[%c0_9, %c0_10], %13 {strides = array<i32>} : memref<8x128xf32, #tpu.memory_space<vmem>>, vector<8x128xf32>,
    %c0_11 = arith.constant 0 : index
    %c0_12 = arith.constant 0 : index
    %c0_13 = arith.constant 0 : index
    %15 = vector.load %arg4[%c0_11, %c0_12, %c0_13] : memref<1x32x128xf32, #tpu.memory_space<vmem>>, vector<1x32x128xf32>
    %16 = vector.shape_cast %15 : vector<1x32x128xf32> to vector<32x128xf32>
    %17 = arith.truncf %16 : vector<32x128xf32> to vector<32x128xbf16>
    %c0_i32_14 = arith.constant 0 : i32
    %c0_i32_15 = arith.constant 0 : i32
    %18 = arith.cmpi eq, %arg0, %c0_i32_15 : i32
    %c3_i32 = arith.constant 3 : i32
    %19 = arith.subi %c3_i32, %c0_i32_14 : i32
    %20 = arith.select %18, %c0_i32_14, %19 : i32
    %c2_i32 = arith.constant 2 : i32
    %21 = arith.muli %20, %c2_i32 : i32
    %22 = tpu.assume_multiple %21, 2 : i32
    %23 = arith.index_cast %22 : i32 to index
    %c0_16 = arith.constant 0 : index
    %24 = vector.load %arg8[%23, %c0_16] : memref<8x128xf32, #tpu.memory_space<vmem>>, vector<2x128xf32>
    %c0_17 = arith.constant 0 : index
    %c0_18 = arith.constant 0 : index
    %25 = vector.load %arg9[%c0_17, %c0_18] : memref<2x32xf32, #tpu.memory_space<vmem>>, vector<2x32xf32>
    %26 = arith.truncf %25 : vector<2x32xf32> to vector<2x32xbf16>
    %cst_19 = arith.constant dense<0.000000e+00> : vector<2x128xf32>
    %27 = tpu.matmul %26, %17, %cst_19 {dimension_numbers = #tpu.dot_dimension_numbers<[1], [0], [0], [1], [0, 0, 1, 1], [], []>} : vector<2x32xbf16>, vector<32x128xbf16>, vector<2x128xf32> -> vector<2x128xf32>
    %28 = arith.addf %24, %27 : vector<2x128xf32>
    %29 = vector.extract_strided_slice %28 {offsets = [0, 0], sizes = [2, 32], strides = [1, 1]} : vector<2x128xf32> to vector<2x32xf32>
    %cst_20 = arith.constant 5.000000e-01 : f32
    %30 = vector.broadcast %cst_20 : f32 to vector<2x32xf32>
    %31 = arith.mulf %30, %29 : vector<2x32xf32>
    %32 = math.tanh %31 : vector<2x32xf32>
    %cst_21 = arith.constant 5.000000e-01 : f32
    %33 = vector.broadcast %cst_21 : f32 to vector<2x32xf32>
    %34 = arith.mulf %33, %32 : vector<2x32xf32>
    %cst_22 = arith.constant 5.000000e-01 : f32
    %35 = vector.broadcast %cst_22 : f32 to vector<2x32xf32>
    %36 = arith.addf %34, %35 : vector<2x32xf32>
    %37 = vector.extract_strided_slice %28 {offsets = [0, 32], sizes = [2, 32], strides = [1, 1]} : vector<2x128xf32> to vector<2x32xf32>
    %cst_23 = arith.constant 5.000000e-01 : f32
    %38 = vector.broadcast %cst_23 : f32 to vector<2x32xf32>
    %39 = arith.mulf %38, %37 : vector<2x32xf32>
    %40 = math.tanh %39 : vector<2x32xf32>
    %cst_24 = arith.constant 5.000000e-01 : f32
    %41 = vector.broadcast %cst_24 : f32 to vector<2x32xf32>
    %42 = arith.mulf %41, %40 : vector<2x32xf32>
    %cst_25 = arith.constant 5.000000e-01 : f32
    %43 = vector.broadcast %cst_25 : f32 to vector<2x32xf32>
    %44 = arith.addf %42, %43 : vector<2x32xf32>
    %45 = vector.extract_strided_slice %28 {offsets = [0, 64], sizes = [2, 32], strides = [1, 1]} : vector<2x128xf32> to vector<2x32xf32>
    %46 = math.tanh %45 : vector<2x32xf32>
    %47 = vector.extract_strided_slice %28 {offsets = [0, 96], sizes = [2, 32], strides = [1, 1]} : vector<2x128xf32> to vector<2x32xf32>
    %cst_26 = arith.constant 5.000000e-01 : f32
    %48 = vector.broadcast %cst_26 : f32 to vector<2x32xf32>
    %49 = arith.mulf %48, %47 : vector<2x32xf32>
    %50 = math.tanh %49 : vector<2x32xf32>
    %cst_27 = arith.constant 5.000000e-01 : f32
    %51 = vector.broadcast %cst_27 : f32 to vector<2x32xf32>
    %52 = arith.mulf %51, %50 : vector<2x32xf32>
    %cst_28 = arith.constant 5.000000e-01 : f32
    %53 = vector.broadcast %cst_28 : f32 to vector<2x32xf32>
    %54 = arith.addf %52, %53 : vector<2x32xf32>
    %c0_29 = arith.constant 0 : index
    %c0_30 = arith.constant 0 : index
    %55 = vector.load %arg10[%c0_29, %c0_30] : memref<2x32xf32, #tpu.memory_space<vmem>>, vector<2x32xf32>
    %56 = arith.mulf %44, %55 : vector<2x32xf32>
    %57 = arith.mulf %36, %46 : vector<2x32xf32>
    %58 = arith.addf %56, %57 : vector<2x32xf32>
    %59 = math.tanh %58 : vector<2x32xf32>
    %60 = arith.mulf %54, %59 : vector<2x32xf32>
    %c0_31 = arith.constant 0 : index
    %c0_32 = arith.constant 0 : index
    %61 = vector.load %arg10[%c0_31, %c0_32] : memref<2x32xf32, #tpu.memory_space<vmem>>, vector<2x32xf32>
    tpu.vector_store %arg10[%c0_31, %c0_32], %58 {strides = array<i32>} : memref<2x32xf32, #tpu.memory_space<vmem>>, vector<2x32xf32>,
    %c0_33 = arith.constant 0 : index
    %c0_34 = arith.constant 0 : index
    %62 = vector.load %arg9[%c0_33, %c0_34] : memref<2x32xf32, #tpu.memory_space<vmem>>, vector<2x32xf32>
    tpu.vector_store %arg9[%c0_33, %c0_34], %60 {strides = array<i32>} : memref<2x32xf32, #tpu.memory_space<vmem>>, vector<2x32xf32>,
    %c0_35 = arith.constant 0 : index
    %63 = arith.index_cast %22 : i32 to index
    %c0_36 = arith.constant 0 : index
    %64 = vector.load %arg6[%c0_35, %63, %c0_36] : memref<1x8x32xf32, #tpu.memory_space<vmem>>, vector<1x2x32xf32>
    %65 = vector.shape_cast %64 : vector<1x2x32xf32> to vector<2x32xf32>
    %66 = vector.shape_cast %60 : vector<2x32xf32> to vector<1x2x32xf32>
    tpu.vector_store %arg6[%c0_35, %63, %c0_36], %66 {strides = array<i32>} : memref<1x8x32xf32, #tpu.memory_space<vmem>>, vector<1x2x32xf32>,
    %c1_i32 = arith.constant 1 : i32
    %c0_i32_37 = arith.constant 0 : i32
    %67 = arith.cmpi eq, %arg0, %c0_i32_37 : i32
    %c3_i32_38 = arith.constant 3 : i32
    %68 = arith.subi %c3_i32_38, %c1_i32 : i32
    %69 = arith.select %67, %c1_i32, %68 : i32
    %c2_i32_39 = arith.constant 2 : i32
    %70 = arith.muli %69, %c2_i32_39 : i32
    %71 = tpu.assume_multiple %70, 2 : i32
    %72 = arith.index_cast %71 : i32 to index
    %c0_40 = arith.constant 0 : index
    %73 = vector.load %arg8[%72, %c0_40] : memref<8x128xf32, #tpu.memory_space<vmem>>, vector<2x128xf32>
    %c0_41 = arith.constant 0 : index
    %c0_42 = arith.constant 0 : index
    %74 = vector.load %arg9[%c0_41, %c0_42] : memref<2x32xf32, #tpu.memory_space<vmem>>, vector<2x32xf32>
    %75 = arith.truncf %74 : vector<2x32xf32> to vector<2x32xbf16>
    %cst_43 = arith.constant dense<0.000000e+00> : vector<2x128xf32>
    %76 = tpu.matmul %75, %17, %cst_43 {dimension_numbers = #tpu.dot_dimension_numbers<[1], [0], [0], [1], [0, 0, 1, 1], [], []>} : vector<2x32xbf16>, vector<32x128xbf16>, vector<2x128xf32> -> vector<2x128xf32>
    %77 = arith.addf %73, %76 : vector<2x128xf32>
    %78 = vector.extract_strided_slice %77 {offsets = [0, 0], sizes = [2, 32], strides = [1, 1]} : vector<2x128xf32> to vector<2x32xf32>
    %cst_44 = arith.constant 5.000000e-01 : f32
    %79 = vector.broadcast %cst_44 : f32 to vector<2x32xf32>
    %80 = arith.mulf %79, %78 : vector<2x32xf32>
    %81 = math.tanh %80 : vector<2x32xf32>
    %cst_45 = arith.constant 5.000000e-01 : f32
    %82 = vector.broadcast %cst_45 : f32 to vector<2x32xf32>
    %83 = arith.mulf %82, %81 : vector<2x32xf32>
    %cst_46 = arith.constant 5.000000e-01 : f32
    %84 = vector.broadcast %cst_46 : f32 to vector<2x32xf32>
    %85 = arith.addf %83, %84 : vector<2x32xf32>
    %86 = vector.extract_strided_slice %77 {offsets = [0, 32], sizes = [2, 32], strides = [1, 1]} : vector<2x128xf32> to vector<2x32xf32>
    %cst_47 = arith.constant 5.000000e-01 : f32
    %87 = vector.broadcast %cst_47 : f32 to vector<2x32xf32>
    %88 = arith.mulf %87, %86 : vector<2x32xf32>
    %89 = math.tanh %88 : vector<2x32xf32>
    %cst_48 = arith.constant 5.000000e-01 : f32
    %90 = vector.broadcast %cst_48 : f32 to vector<2x32xf32>
    %91 = arith.mulf %90, %89 : vector<2x32xf32>
    %cst_49 = arith.constant 5.000000e-01 : f32
    %92 = vector.broadcast %cst_49 : f32 to vector<2x32xf32>
    %93 = arith.addf %91, %92 : vector<2x32xf32>
    %94 = vector.extract_strided_slice %77 {offsets = [0, 64], sizes = [2, 32], strides = [1, 1]} : vector<2x128xf32> to vector<2x32xf32>
    %95 = math.tanh %94 : vector<2x32xf32>
    %96 = vector.extract_strided_slice %77 {offsets = [0, 96], sizes = [2, 32], strides = [1, 1]} : vector<2x128xf32> to vector<2x32xf32>
    %cst_50 = arith.constant 5.000000e-01 : f32
    %97 = vector.broadcast %cst_50 : f32 to vector<2x32xf32>
    %98 = arith.mulf %97, %96 : vector<2x32xf32>
    %99 = math.tanh %98 : vector<2x32xf32>
    %cst_51 = arith.constant 5.000000e-01 : f32
    %100 = vector.broadcast %cst_51 : f32 to vector<2x32xf32>
    %101 = arith.mulf %100, %99 : vector<2x32xf32>
    %cst_52 = arith.constant 5.000000e-01 : f32
    %102 = vector.broadcast %cst_52 : f32 to vector<2x32xf32>
    %103 = arith.addf %101, %102 : vector<2x32xf32>
    %c0_53 = arith.constant 0 : index
    %c0_54 = arith.constant 0 : index
    %104 = vector.load %arg10[%c0_53, %c0_54] : memref<2x32xf32, #tpu.memory_space<vmem>>, vector<2x32xf32>
    %105 = arith.mulf %93, %104 : vector<2x32xf32>
    %106 = arith.mulf %85, %95 : vector<2x32xf32>
    %107 = arith.addf %105, %106 : vector<2x32xf32>
    %108 = math.tanh %107 : vector<2x32xf32>
    %109 = arith.mulf %103, %108 : vector<2x32xf32>
    %c0_55 = arith.constant 0 : index
    %c0_56 = arith.constant 0 : index
    %110 = vector.load %arg10[%c0_55, %c0_56] : memref<2x32xf32, #tpu.memory_space<vmem>>, vector<2x32xf32>
    tpu.vector_store %arg10[%c0_55, %c0_56], %107 {strides = array<i32>} : memref<2x32xf32, #tpu.memory_space<vmem>>, vector<2x32xf32>,
    %c0_57 = arith.constant 0 : index
    %c0_58 = arith.constant 0 : index
    %111 = vector.load %arg9[%c0_57, %c0_58] : memref<2x32xf32, #tpu.memory_space<vmem>>, vector<2x32xf32>
    tpu.vector_store %arg9[%c0_57, %c0_58], %109 {strides = array<i32>} : memref<2x32xf32, #tpu.memory_space<vmem>>, vector<2x32xf32>,
    %c0_59 = arith.constant 0 : index
    %112 = arith.index_cast %71 : i32 to index
    %c0_60 = arith.constant 0 : index
    %113 = vector.load %arg6[%c0_59, %112, %c0_60] : memref<1x8x32xf32, #tpu.memory_space<vmem>>, vector<1x2x32xf32>
    %114 = vector.shape_cast %113 : vector<1x2x32xf32> to vector<2x32xf32>
    %115 = vector.shape_cast %109 : vector<2x32xf32> to vector<1x2x32xf32>
    tpu.vector_store %arg6[%c0_59, %112, %c0_60], %115 {strides = array<i32>} : memref<1x8x32xf32, #tpu.memory_space<vmem>>, vector<1x2x32xf32>,
    %c2_i32_61 = arith.constant 2 : i32
    %c0_i32_62 = arith.constant 0 : i32
    %116 = arith.cmpi eq, %arg0, %c0_i32_62 : i32
    %c3_i32_63 = arith.constant 3 : i32
    %117 = arith.subi %c3_i32_63, %c2_i32_61 : i32
    %118 = arith.select %116, %c2_i32_61, %117 : i32
    %c2_i32_64 = arith.constant 2 : i32
    %119 = arith.muli %118, %c2_i32_64 : i32
    %120 = tpu.assume_multiple %119, 2 : i32
    %121 = arith.index_cast %120 : i32 to index
    %c0_65 = arith.constant 0 : index
    %122 = vector.load %arg8[%121, %c0_65] : memref<8x128xf32, #tpu.memory_space<vmem>>, vector<2x128xf32>
    %c0_66 = arith.constant 0 : index
    %c0_67 = arith.constant 0 : index
    %123 = vector.load %arg9[%c0_66, %c0_67] : memref<2x32xf32, #tpu.memory_space<vmem>>, vector<2x32xf32>
    %124 = arith.truncf %123 : vector<2x32xf32> to vector<2x32xbf16>
    %cst_68 = arith.constant dense<0.000000e+00> : vector<2x128xf32>
    %125 = tpu.matmul %124, %17, %cst_68 {dimension_numbers = #tpu.dot_dimension_numbers<[1], [0], [0], [1], [0, 0, 1, 1], [], []>} : vector<2x32xbf16>, vector<32x128xbf16>, vector<2x128xf32> -> vector<2x128xf32>
    %126 = arith.addf %122, %125 : vector<2x128xf32>
    %127 = vector.extract_strided_slice %126 {offsets = [0, 0], sizes = [2, 32], strides = [1, 1]} : vector<2x128xf32> to vector<2x32xf32>
    %cst_69 = arith.constant 5.000000e-01 : f32
    %128 = vector.broadcast %cst_69 : f32 to vector<2x32xf32>
    %129 = arith.mulf %128, %127 : vector<2x32xf32>
    %130 = math.tanh %129 : vector<2x32xf32>
    %cst_70 = arith.constant 5.000000e-01 : f32
    %131 = vector.broadcast %cst_70 : f32 to vector<2x32xf32>
    %132 = arith.mulf %131, %130 : vector<2x32xf32>
    %cst_71 = arith.constant 5.000000e-01 : f32
    %133 = vector.broadcast %cst_71 : f32 to vector<2x32xf32>
    %134 = arith.addf %132, %133 : vector<2x32xf32>
    %135 = vector.extract_strided_slice %126 {offsets = [0, 32], sizes = [2, 32], strides = [1, 1]} : vector<2x128xf32> to vector<2x32xf32>
    %cst_72 = arith.constant 5.000000e-01 : f32
    %136 = vector.broadcast %cst_72 : f32 to vector<2x32xf32>
    %137 = arith.mulf %136, %135 : vector<2x32xf32>
    %138 = math.tanh %137 : vector<2x32xf32>
    %cst_73 = arith.constant 5.000000e-01 : f32
    %139 = vector.broadcast %cst_73 : f32 to vector<2x32xf32>
    %140 = arith.mulf %139, %138 : vector<2x32xf32>
    %cst_74 = arith.constant 5.000000e-01 : f32
    %141 = vector.broadcast %cst_74 : f32 to vector<2x32xf32>
    %142 = arith.addf %140, %141 : vector<2x32xf32>
    %143 = vector.extract_strided_slice %126 {offsets = [0, 64], sizes = [2, 32], strides = [1, 1]} : vector<2x128xf32> to vector<2x32xf32>
    %144 = math.tanh %143 : vector<2x32xf32>
    %145 = vector.extract_strided_slice %126 {offsets = [0, 96], sizes = [2, 32], strides = [1, 1]} : vector<2x128xf32> to vector<2x32xf32>
    %cst_75 = arith.constant 5.000000e-01 : f32
    %146 = vector.broadcast %cst_75 : f32 to vector<2x32xf32>
    %147 = arith.mulf %146, %145 : vector<2x32xf32>
    %148 = math.tanh %147 : vector<2x32xf32>
    %cst_76 = arith.constant 5.000000e-01 : f32
    %149 = vector.broadcast %cst_76 : f32 to vector<2x32xf32>
    %150 = arith.mulf %149, %148 : vector<2x32xf32>
    %cst_77 = arith.constant 5.000000e-01 : f32
    %151 = vector.broadcast %cst_77 : f32 to vector<2x32xf32>
    %152 = arith.addf %150, %151 : vector<2x32xf32>
    %c0_78 = arith.constant 0 : index
    %c0_79 = arith.constant 0 : index
    %153 = vector.load %arg10[%c0_78, %c0_79] : memref<2x32xf32, #tpu.memory_space<vmem>>, vector<2x32xf32>
    %154 = arith.mulf %142, %153 : vector<2x32xf32>
    %155 = arith.mulf %134, %144 : vector<2x32xf32>
    %156 = arith.addf %154, %155 : vector<2x32xf32>
    %157 = math.tanh %156 : vector<2x32xf32>
    %158 = arith.mulf %152, %157 : vector<2x32xf32>
    %c0_80 = arith.constant 0 : index
    %c0_81 = arith.constant 0 : index
    %159 = vector.load %arg10[%c0_80, %c0_81] : memref<2x32xf32, #tpu.memory_space<vmem>>, vector<2x32xf32>
    tpu.vector_store %arg10[%c0_80, %c0_81], %156 {strides = array<i32>} : memref<2x32xf32, #tpu.memory_space<vmem>>, vector<2x32xf32>,
    %c0_82 = arith.constant 0 : index
    %c0_83 = arith.constant 0 : index
    %160 = vector.load %arg9[%c0_82, %c0_83] : memref<2x32xf32, #tpu.memory_space<vmem>>, vector<2x32xf32>
    tpu.vector_store %arg9[%c0_82, %c0_83], %158 {strides = array<i32>} : memref<2x32xf32, #tpu.memory_space<vmem>>, vector<2x32xf32>,
    %c0_84 = arith.constant 0 : index
    %161 = arith.index_cast %120 : i32 to index
    %c0_85 = arith.constant 0 : index
    %162 = vector.load %arg6[%c0_84, %161, %c0_85] : memref<1x8x32xf32, #tpu.memory_space<vmem>>, vector<1x2x32xf32>
    %163 = vector.shape_cast %162 : vector<1x2x32xf32> to vector<2x32xf32>
    %164 = vector.shape_cast %158 : vector<2x32xf32> to vector<1x2x32xf32>
    tpu.vector_store %arg6[%c0_84, %161, %c0_85], %164 {strides = array<i32>} : memref<1x8x32xf32, #tpu.memory_space<vmem>>, vector<1x2x32xf32>,
    %c3_i32_86 = arith.constant 3 : i32
    %c0_i32_87 = arith.constant 0 : i32
    %165 = arith.cmpi eq, %arg0, %c0_i32_87 : i32
    %c3_i32_88 = arith.constant 3 : i32
    %166 = arith.subi %c3_i32_88, %c3_i32_86 : i32
    %167 = arith.select %165, %c3_i32_86, %166 : i32
    %c2_i32_89 = arith.constant 2 : i32
    %168 = arith.muli %167, %c2_i32_89 : i32
    %169 = tpu.assume_multiple %168, 2 : i32
    %170 = arith.index_cast %169 : i32 to index
    %c0_90 = arith.constant 0 : index
    %171 = vector.load %arg8[%170, %c0_90] : memref<8x128xf32, #tpu.memory_space<vmem>>, vector<2x128xf32>
    %c0_91 = arith.constant 0 : index
    %c0_92 = arith.constant 0 : index
    %172 = vector.load %arg9[%c0_91, %c0_92] : memref<2x32xf32, #tpu.memory_space<vmem>>, vector<2x32xf32>
    %173 = arith.truncf %172 : vector<2x32xf32> to vector<2x32xbf16>
    %cst_93 = arith.constant dense<0.000000e+00> : vector<2x128xf32>
    %174 = tpu.matmul %173, %17, %cst_93 {dimension_numbers = #tpu.dot_dimension_numbers<[1], [0], [0], [1], [0, 0, 1, 1], [], []>} : vector<2x32xbf16>, vector<32x128xbf16>, vector<2x128xf32> -> vector<2x128xf32>
    %175 = arith.addf %171, %174 : vector<2x128xf32>
    %176 = vector.extract_strided_slice %175 {offsets = [0, 0], sizes = [2, 32], strides = [1, 1]} : vector<2x128xf32> to vector<2x32xf32>
    %cst_94 = arith.constant 5.000000e-01 : f32
    %177 = vector.broadcast %cst_94 : f32 to vector<2x32xf32>
    %178 = arith.mulf %177, %176 : vector<2x32xf32>
    %179 = math.tanh %178 : vector<2x32xf32>
    %cst_95 = arith.constant 5.000000e-01 : f32
    %180 = vector.broadcast %cst_95 : f32 to vector<2x32xf32>
    %181 = arith.mulf %180, %179 : vector<2x32xf32>
    %cst_96 = arith.constant 5.000000e-01 : f32
    %182 = vector.broadcast %cst_96 : f32 to vector<2x32xf32>
    %183 = arith.addf %181, %182 : vector<2x32xf32>
    %184 = vector.extract_strided_slice %175 {offsets = [0, 32], sizes = [2, 32], strides = [1, 1]} : vector<2x128xf32> to vector<2x32xf32>
    %cst_97 = arith.constant 5.000000e-01 : f32
    %185 = vector.broadcast %cst_97 : f32 to vector<2x32xf32>
    %186 = arith.mulf %185, %184 : vector<2x32xf32>
    %187 = math.tanh %186 : vector<2x32xf32>
    %cst_98 = arith.constant 5.000000e-01 : f32
    %188 = vector.broadcast %cst_98 : f32 to vector<2x32xf32>
    %189 = arith.mulf %188, %187 : vector<2x32xf32>
    %cst_99 = arith.constant 5.000000e-01 : f32
    %190 = vector.broadcast %cst_99 : f32 to vector<2x32xf32>
    %191 = arith.addf %189, %190 : vector<2x32xf32>
    %192 = vector.extract_strided_slice %175 {offsets = [0, 64], sizes = [2, 32], strides = [1, 1]} : vector<2x128xf32> to vector<2x32xf32>
    %193 = math.tanh %192 : vector<2x32xf32>
    %194 = vector.extract_strided_slice %175 {offsets = [0, 96], sizes = [2, 32], strides = [1, 1]} : vector<2x128xf32> to vector<2x32xf32>
    %cst_100 = arith.constant 5.000000e-01 : f32
    %195 = vector.broadcast %cst_100 : f32 to vector<2x32xf32>
    %196 = arith.mulf %195, %194 : vector<2x32xf32>
    %197 = math.tanh %196 : vector<2x32xf32>
    %cst_101 = arith.constant 5.000000e-01 : f32
    %198 = vector.broadcast %cst_101 : f32 to vector<2x32xf32>
    %199 = arith.mulf %198, %197 : vector<2x32xf32>
    %cst_102 = arith.constant 5.000000e-01 : f32
    %200 = vector.broadcast %cst_102 : f32 to vector<2x32xf32>
    %201 = arith.addf %199, %200 : vector<2x32xf32>
    %c0_103 = arith.constant 0 : index
    %c0_104 = arith.constant 0 : index
    %202 = vector.load %arg10[%c0_103, %c0_104] : memref<2x32xf32, #tpu.memory_space<vmem>>, vector<2x32xf32>
    %203 = arith.mulf %191, %202 : vector<2x32xf32>
    %204 = arith.mulf %183, %193 : vector<2x32xf32>
    %205 = arith.addf %203, %204 : vector<2x32xf32>
    %206 = math.tanh %205 : vector<2x32xf32>
    %207 = arith.mulf %201, %206 : vector<2x32xf32>
    %c0_105 = arith.constant 0 : index
    %c0_106 = arith.constant 0 : index
    %208 = vector.load %arg10[%c0_105, %c0_106] : memref<2x32xf32, #tpu.memory_space<vmem>>, vector<2x32xf32>
    tpu.vector_store %arg10[%c0_105, %c0_106], %205 {strides = array<i32>} : memref<2x32xf32, #tpu.memory_space<vmem>>, vector<2x32xf32>,
    %c0_107 = arith.constant 0 : index
    %c0_108 = arith.constant 0 : index
    %209 = vector.load %arg9[%c0_107, %c0_108] : memref<2x32xf32, #tpu.memory_space<vmem>>, vector<2x32xf32>
    tpu.vector_store %arg9[%c0_107, %c0_108], %207 {strides = array<i32>} : memref<2x32xf32, #tpu.memory_space<vmem>>, vector<2x32xf32>,
    %c0_109 = arith.constant 0 : index
    %210 = arith.index_cast %169 : i32 to index
    %c0_110 = arith.constant 0 : index
    %211 = vector.load %arg6[%c0_109, %210, %c0_110] : memref<1x8x32xf32, #tpu.memory_space<vmem>>, vector<1x2x32xf32>
    %212 = vector.shape_cast %211 : vector<1x2x32xf32> to vector<2x32xf32>
    %213 = vector.shape_cast %207 : vector<2x32xf32> to vector<1x2x32xf32>
    tpu.vector_store %arg6[%c0_109, %210, %c0_110], %213 {strides = array<i32>} : memref<1x8x32xf32, #tpu.memory_space<vmem>>, vector<1x2x32xf32>,
    %c4_i32 = arith.constant 4 : i32
    %c1_i32_111 = arith.constant 1 : i32
    %214 = arith.cmpi eq, %arg1, %c1_i32_111 : i32
    %215 = arith.extui %214 : i1 to i32
    %c0_i32_112 = arith.constant 0 : i32
    %216 = arith.cmpi ne, %215, %c0_i32_112 : i32
    scf.if %216 {
      %c0_113 = arith.constant 0 : index
      %c0_114 = arith.constant 0 : index
      %217 = vector.load %arg9[%c0_113, %c0_114] : memref<2x32xf32, #tpu.memory_space<vmem>>, vector<2x32xf32>
      %c0_115 = arith.constant 0 : index
      %c0_116 = arith.constant 0 : index
      %c0_117 = arith.constant 0 : index
      %218 = vector.load %arg7[%c0_115, %c0_116, %c0_117] : memref<1x2x32xf32, #tpu.memory_space<vmem>>, vector<1x2x32xf32>
      %219 = vector.shape_cast %218 : vector<1x2x32xf32> to vector<2x32xf32>
      %220 = vector.shape_cast %217 : vector<2x32xf32> to vector<1x2x32xf32>
      tpu.vector_store %arg7[%c0_115, %c0_116, %c0_117], %220 {strides = array<i32>} : memref<1x2x32xf32, #tpu.memory_space<vmem>>, vector<1x2x32xf32>,
    } else {
    }
    return
  }
  func.func @transform_0(%arg0: i32, %arg1: i32) -> (i32, i32, i32) {
    %c1_i32 = arith.constant 1 : i32
    %0 = arith.subi %c1_i32, %arg0 : i32
    %1 = arith.muli %arg1, %0 : i32
    %c1_i32_0 = arith.constant 1 : i32
    %2 = arith.subi %c1_i32_0, %arg1 : i32
    %3 = arith.muli %2, %arg0 : i32
    %4 = arith.addi %1, %3 : i32
    %c0_i32 = arith.constant 0 : i32
    %c0_i32_1 = arith.constant 0 : i32
    %c0_i32_2 = arith.constant 0 : i32
    return %c0_i32, %4, %c0_i32_1 : i32, i32, i32
  }
  func.func @transform_1(%arg0: i32, %arg1: i32) -> (i32, i32, i32) {
    %c0_i32 = arith.constant 0 : i32
    %c0_i32_0 = arith.constant 0 : i32
    %c0_i32_1 = arith.constant 0 : i32
    return %arg0, %c0_i32, %c0_i32_0 : i32, i32, i32
  }
  func.func @transform_2(%arg0: i32, %arg1: i32) -> (i32, i32, i32) {
    %c0_i32 = arith.constant 0 : i32
    %c0_i32_0 = arith.constant 0 : i32
    %c0_i32_1 = arith.constant 0 : i32
    return %arg0, %c0_i32, %c0_i32_0 : i32, i32, i32
  }
  func.func @transform_3(%arg0: i32, %arg1: i32) -> (i32, i32, i32) {
    %c0_i32 = arith.constant 0 : i32
    %c0_i32_0 = arith.constant 0 : i32
    %c0_i32_1 = arith.constant 0 : i32
    return %arg0, %c0_i32, %c0_i32_0 : i32, i32, i32
  }
  func.func @transform_4(%arg0: i32, %arg1: i32) -> (i32, i32, i32) {
    %c1_i32 = arith.constant 1 : i32
    %0 = arith.subi %c1_i32, %arg0 : i32
    %1 = arith.muli %arg1, %0 : i32
    %c1_i32_0 = arith.constant 1 : i32
    %2 = arith.subi %c1_i32_0, %arg1 : i32
    %3 = arith.muli %2, %arg0 : i32
    %4 = arith.addi %1, %3 : i32
    %c0_i32 = arith.constant 0 : i32
    %c0_i32_1 = arith.constant 0 : i32
    return %arg0, %4, %c0_i32 : i32, i32, i32
  }
  func.func @transform_5(%arg0: i32, %arg1: i32) -> (i32, i32, i32) {
    %c0_i32 = arith.constant 0 : i32
    %c0_i32_0 = arith.constant 0 : i32
    %c0_i32_1 = arith.constant 0 : i32
    return %arg0, %c0_i32, %c0_i32_0 : i32, i32, i32
  }
}

</mosaic_0001>

<bundles_post_ra>
// kernel: tpu_custom_call.1
= control target key start
LH: loop header
LB: loop body
LE: loop exit
PB: predicated region body
PF: predicated region fallthrough
CT: control target
= control target key end

     0   :  { %s1914_s0 = inlined_call_operand.hbm [shape: f32[1,16,32], index: 0, kind: input, shape index: {}]   ;;  %s1915_s1 = inlined_call_operand.hbm [shape: f32[2,32,128], index: 1, kind: input, shape index: {}]   ;;  %s1916_s2 = inlined_call_operand.hbm [shape: f32[2,32,128], index: 2, kind: input, shape index: {}]   ;;  %s1917_s3 = inlined_call_operand.vmem [shape: f32[2,1,128], index: 3, kind: input, shape index: {}]   ;;  %s1918_s4 = inlined_call_operand.hbm [shape: f32[2,16,32], index: 4, kind: output, shape index: {0}]   ;;  %s1919_s5 = inlined_call_operand.hbm [shape: f32[2,2,32], index: 5, kind: output, shape index: {1}]  }
   0x1   :  { %1942 = sst [smem:[#allocation34_spill]] %s1914_s0 }
   0x2   :  { %1943 = sst [smem:[#allocation35_spill]] %s1915_s1 }
   0x3   :  { %1944 = sst [smem:[#allocation36_spill]] %s1916_s2 }
   0x4   :  { %1945 = sst [smem:[#allocation37_spill]] %s1917_s3 }
   0x5   :  { %1946 = sst [smem:[#allocation38_spill]] %s1918_s4 }
   0x6   :  { %1947 = sst [smem:[#allocation39_spill]] %s1919_s5 }
   0x7   :  { %11 = vsyncpa [#allocation6], 0 }
   0x8   :  { %13 = vsyncpa [#allocation6 + $0x1], 0 }
   0x9   :  { %14 = vsyncpa [#allocation9], 0 }
   0xa   :  { %16 = vsyncpa [#allocation9 + $0x1], 0 }
   0xb   :  { %17 = vsyncpa [#allocation7], 0 }
   0xc   :  { %19 = vsyncpa [#allocation7 + $0x1], 0 }
   0xd   :  { %20 = vsyncpa [#allocation13], 0 }
   0xe   :  { %22 = vsyncpa [#allocation13 + $0x1], 0  ;;  %s1445_s18 = smov 0   ;;  %s1447_s19 = smov 0  }
   0xf   :  { %s1449_s20 = smov 0   ;;  %s1451_s21 = smov 0  }
  0x10   :  { %s1453_s22 = smov 0   ;;  %s1455_s23 = smov 0  }
  0x11   :  { %s1457_s24 = smov 0   ;;  %s1459_s25 = smov 0  }
  0x12   :  { %s1461_s26 = smov 0   ;;  %s1463_s27 = smov 0  }
  0x13   :  { %s1465_s28 = smov 0   ;;  %s1467_s29 = smov 0  }
  0x14   :  { %s1469_s30 = smov 0   ;;  %s1471_s6 = smov 0  }
  0x15 LB: > { %1948 = sst [smem:[#allocation18_spill]] %s1363_s20  ;;  %s926_s7 = sadd.s32 4294967294, %s1407_s6   ;;  %s1407_s6 = sphi %s1471_s6, %s28_s6   ;;  %s1403_s30 = sphi %s1469_s30, %s2011_s30   ;;  %s1399_s29 = sphi %s1467_s29, %s2010_s29   ;;  %s1395_s28 = sphi %s1465_s28, %s2009_s28   ;;  %s1391_s27 = sphi %s1463_s27, %s2008_s27   ;;  %s1387_s26 = sphi %s1461_s26, %s2007_s26   ;;  %s1383_s25 = sphi %s1459_s25, %s2006_s25   ;;  %s1379_s24 = sphi %s1457_s24, %s2017_s24   ;;  %s1375_s23 = sphi %s1455_s23, %s2004_s23   ;;  %s1371_s22 = sphi %s1453_s22, %s2016_s22   ;;  %s1367_s21 = sphi %s1451_s21, %s2015_s21   ;;  %s1363_s20 = sphi %s1449_s20, %s2002_s20   ;;  %s1359_s19 = sphi %s1447_s19, %s2014_s19   ;;  %s1355_s18 = sphi %s1445_s18, %s2013_s18  }
  0x16   : > { %1949 = sst [smem:[#allocation19_spill]] %s1367_s21  ;;  %p65_p0 = scmp.eq.s32.totalorder %s1407_s6, 0 }
  0x17   : > { %1950 = sst [smem:[#allocation20_spill]] %s1375_s23  ;;  %p1933_p1 = scmp.ne.s32.totalorder %s1375_s23, %s1371_s22 }
  0x18   : > { %1951 = sst [smem:[#allocation21_spill]] %s1383_s25  ;;  %p96_p2 = scmp.ne.s32.totalorder %s1371_s22, %s1367_s21 }
  0x19   : > { %1952 = sst [smem:[#allocation22_spill]] %s1387_s26  ;;  %p1521_p3 = scmp.eq.s32.totalorder %s926_s7, 3 }
  0x1a   : > { %1953 = sst [smem:[#allocation23_spill]] %s1391_s27  ;;  %p1530_p4 = por %p1933_p1, %p65_p0 }
  0x1b   : > { %1954 = sst [smem:[#allocation24_spill]] %s1395_s28  ;;  %p1932_p5 = scmp.lt.s32.totalorder %s1407_s6, 4 }
  0x1c   : > { %1955 = sst [smem:[#allocation25_spill]] %s1399_s29  ;;  %p1540_p6 = por %p1521_p3, %p96_p2 }
  0x1d   : > { %1956 = sst [smem:[#allocation26_spill]] %s1403_s30  ;;  %s260_s11 = sand.u32 1, %s1407_s6  }
  0x1e   : > { %s1959_s10 = scalar_select %p1540_p6, 1, 0 }
  0x1f   : > { %s262_s12 = sand.u32 1, %s1375_s23   ;;  %s961_s14 = sshll.u32 %s1403_s30, 5 }
  0x20   : > { %1960 = sst [smem:[#allocation27_spill]] %s1959_s10  ;;  %s931_s13 = sshll.u32 %s262_s12, 5 }
  0x21   : > { %s1961_s1 = sld [smem:[#allocation35_spill]]  ;;  %s264_s4 = scalar_lea.vmem [#allocation8], %s931_s13 }
  0x22   : > { %s272_s5 = sshll.u32 %s264_s4, 4  ;;  %p1554_p7 = pnand %p1932_p5, %p1530_p4  ;;  %s273_s5 = int_to_ptr.vmem [resolvable:$true] %s272_s5 }
  0x23   : > { %s1963_s2 = sld [smem:[#allocation36_spill]]  ;;  %s1561_s16 = scalar_lea.sflag [#allocation9], %s260_s11 }
  0x24   : > { %s1924_s4 = smov 128   ;;  %p937_p8 = scmp.ge.s32.totalorder %s1407_s6, 1 }
  0x25   : > { %p308_p9 = scmp.lt.s32.totalorder %s1407_s6, 5  ;;  %s46_s12 = ssub.s32 1, %s1399_s29 }
  0x26   : > { %p64_p13 = scmp.ne.s32.totalorder %s1387_s26, %s1383_s25  ;;  %p183_p5 = scmp.ne.s32.totalorder %s1363_s20, %s1359_s19 }
  0x27   : > { %s269_s17 = scalar_lea.hbm %s1961_s1, %s961_s14  ;;  %s286_s1 = scalar_lea.vmem [#allocation10], %s931_s13 }
  0x28   : > { %s270_s7 = sshll.u32 %s269_s17, 4  ;;  %s1925_s17 = smov 8   ;;  %s271_s7 = int_to_ptr.hbm [resolvable:$true] %s270_s7 }
  0x29   : > { %s291_s15 = scalar_lea.hbm %s1963_s2, %s961_s14  ;;  %s1569_s27 = sshll.u32 %s286_s1, 4 }
  0x2a   : > { %979 = dma.hbm_to_vmem [thread:$0]  (!%p1554_p7), %s271_s7, 512, %s273_s5, %s1561_s16, %s1924_s4, %s1924_s4, %s1925_s17  }
  0x2b   : > { %s292_s9 = sshll.u32 %s291_s15, 4  ;;  %1964 = sst [smem:[#allocation28_spill]] %s1569_s27  ;;  %s1571_s9 = int_to_ptr.hbm [resolvable:$true] %s292_s9 }
  0x2c   : > { %p1576_p10 = pnand %p937_p8, %p308_p9  ;;  %s1581_s5 = sadd.s32 4294967295, %s1407_s6  }
  0x2d   : > { %s37_s13 = sadd.s32 1, %s1399_s29  ;;  %s40_s1 = sadd.s32 1, %s1403_s30 }
  0x2e   : > { %p38_p11 = scmp.ge.s32.totalorder %s37_s13, 2  ;;  %s44_s14 = ssub.s32 1, %s1403_s30 }
  0x2f   : > { %s45_s7 = smul.u32 %s1399_s29, %s44_s14  ;;  %s57_s17 = sadd.s32 1, %s1387_s26 }
  0x30   : > { %s2019_s13 = smov (%p38_p11, %s37_s13), 0  ;;  %s2021_s1 = smov (!%p38_p11, %s40_s1), %s1403_s30 }
  0x31   : > { %1966 = sst [smem:[#allocation29_spill]] %s2019_s13  ;;  %s47_s15 = smul.u32 %s1403_s30, %s46_s12 }
  0x32   : > { %s51_s4 = ssub.s32 1, %s2019_s13  ;;  %p42_p12 = scmp.ge.s32.totalorder %s2021_s1, 2 }
  0x33   : > { %s1594_s27 = sadd.s32 %s47_s15, %s45_s7  ;;  %p1602_p4 = por %p65_p0, %p64_p13 }
  0x34   : > { %s2023_s1 = smov (%p42_p12, %s2021_s1), 0  ;;  %p70_p8 = scmp.ne.s32.totalorder %s1383_s25, %s1379_s24 }
  0x35   : > { %1967 = sst [smem:[#allocation30_spill]] %s2023_s1  ;;  %s49_s7 = ssub.s32 1, %s2023_s1 }
  0x36   : > { %s52_s12 = smul.u32 %s51_s4, %s2023_s1  ;;  %p71_p9 = scmp.eq.s32.totalorder %s1581_s5, 0 }
  0x37   : > { %s50_s15 = smul.u32 %s49_s7, %s2019_s13  ;;  %s80_s2 = ssub.s32 %s1403_s30, %s2023_s1 }
  0x38   : > { %s83_s29 = sadd.s32 1, %s1375_s23  ;;  %p1615_p0 = por %p71_p9, %p70_p8 }
  0x39   : > { %s53_s3 = sadd.s32 %s52_s12, %s50_s15  ;;  %p81_p11 = scmp.eq.s32.totalorder %s80_s2, 0 }
  0x3a   : > { %s54_s24 = ssub.s32 %s1594_s27, %s53_s3  ;;  %p1623_p13 = por %p96_p2, %p71_p9 }
  0x3b   : > { %p55_p12 = scmp.eq.s32.totalorder %s54_s24, 0  ;;  %s170_s15 = sor.u32 %s80_s2, %s54_s24 }
  0x3c   : > { %s1628_s7 = scalar_select %p81_p11, %s1375_s23, %s83_s29  }
  0x3d   : > { %s1631_s12 = scalar_select %p55_p12, %s1387_s26, %s57_s17  }
  0x3e   : > { %1971 = sst [smem:[#allocation31_spill]] %s1628_s7  ;;  %s173_s1 = sadd.s32 1, %s1363_s20 }
  0x3f   : > { %1972 = sst [smem:[#allocation32_spill]] %s1631_s12  ;;  %p171_p8 = scmp.eq.s32.totalorder %s170_s15, 0 }
  0x40   : > { %p184_p1 = scmp.eq.s32.totalorder %s1581_s5, 3  ;;  %s1973_s3 = sld [smem:[#allocation28_spill]] }
  0x41   : > { %p189_p6 = scmp.ne.s32.totalorder %s1359_s19, %s1355_s18  ;;  %p1977_p11 = scmp.ne.s32.totalorder %s1375_s23, %s1371_s22 }
  0x42   : > { %s1640_s13 = scalar_select %p171_p8, %s1363_s20, %s173_s1  }
  0x43   : > { %p1642_p2 = por %p184_p1, %p183_p5  ;;  %p1648_p9 = por %p1521_p3, %p189_p6 }
  0x44   : > { %1974 = sst [smem:[#allocation33_spill]] %s1640_s13  ;;  %p1655_p12 = por %p184_p1, %p1977_p11 }
  0x45   : > { %s236_s17 = sand.u32 1, %s1387_s26   ;;  %s930_s15 = sshll.u32 %s1594_s27, 3 }
  0x46   : > { %s929_s24 = sshll.u32 %s236_s17, 3  ;;  %s1979_s0 = sld [smem:[#allocation34_spill]] }
  0x47   : > { %s240_s13 = scalar_lea.vmem [#allocation5], %s929_s24  ;;  %p1980_p3 = scmp.lt.s32.totalorder %s1407_s6, 4 }
  0x48   : > { %s253_s20 = sshll.u32 %s240_s13, 4  ;;  %s1982_s23 = smov 8   ;;  %s254_s20 = int_to_ptr.vmem [resolvable:$true] %s253_s20 }
  0x49   : > { %p1668_p5 = pnand %p1980_p3, %p1602_p4  ;;  %s1983_s26 = smov 128  }
  0x4a   : > { %s1984_s27 = int_to_ptr.vmem [resolvable:$true] %s1973_s3  ;;  %s237_s12 = scalar_lea.sflag [#allocation6], %s236_s17 }
  0x4b   : > { %982 = dma.hbm_to_vmem [thread:$0]  (!%p1554_p7), %s1571_s9, 512, %s1984_s27, %s1561_s16, %s1983_s26, %s1983_s26, %s1982_s23  }
  0x4c   : > { %s249_s7 = scalar_lea.hbm %s1979_s0, %s930_s15  ;;  %p1199_p6 = pneg %p1668_p5 }
  0x4d   : > { %s251_s21 = sshll.u32 %s249_s7, 4  ;;  %s1202_s24 = scalar_lea.hbm %s1979_s0, 16  ;;  %s252_s21 = int_to_ptr.hbm [resolvable:$true] %s251_s21 }
  0x4e   : > { %s1195_s15 = sshra.s32 %s252_s21, 4  ;;  %s1196_s15 = int_to_ptr.hbm [resolvable:$true] %s1195_s15 }
  0x4f   : > { %s1197_s13 = scalar_lea.hbm %s1196_s15, 8 }
  0x50   : > { %p1198_p1 = scmp.ne.s32.totalorder %s1196_s15, %s1197_s13  ;;  %p1204_p4 = scmp.lt.s32.totalorder %s1202_s24, %s1197_s13 }
  0x52   : > { %p1200_p8 = pnand %p1199_p6, %p1198_p1 }
  0x54   : > { %p1201_p11 = pneg %p1200_p8 }
  0x56   : > { %p1206_p3 = pnand %p1204_p4, %p1201_p11 }
  0x58   : > { %1209 = shalt.err (!%p1206_p3)
}
  0x59   : > { %976 = dma.hbm_to_vmem [thread:$0]  (!%p1668_p5), %s252_s21, 128, %s254_s20, %s237_s12  }
  0x5a   : > { %312 = sbr.rel (%p1576_p10) target bundleno = 2542 (0x9ee), region = 36  ;;  %s314_s23 = sand.u32 (!%p1576_p10), 1, %s1383_s25  }
  0x5b   : > { %s1691_s26 = sshll.u32 (!%p1576_p10), %s314_s23, 3  ;;  %s315_s10 = scalar_lea.sflag (!%p1576_p10), [#allocation6], %s314_s23 }
  0x5c   : > { %s318_s16 = scalar_lea.vmem (!%p1576_p10), [#allocation5], %s1691_s26 }
  0x5f   : > { %1338 = dma.done.wait (%p1615_p0), %s315_s10, 128  }
  0x60   : > { %1340 = vsyncadd (%p1615_p0), %s315_s10, 4294967168  ;;  %s324_s20 = sand.u32 1, %s1581_s5   ;;  %s1700_s21 = sand.u32 1, %s1371_s22  }
  0x61   : > { %s939_s9 = sshll.u32 %s1700_s21, 5  ;;  %s325_s11 = scalar_lea.sflag [#allocation9], %s324_s20 }
  0x62   : > { %s328_s3 = scalar_lea.vmem [#allocation8], %s939_s9 }
  0x63   : > { %1342 = dma.done.wait (%p1623_p13), %s325_s11, 1024  }
  0x64   : > { %1344 = vsyncadd (%p1623_p13), %s325_s11, 4294966272  ;;  %s1985_s28 = sld [smem:[#allocation24_spill]]  ;;  %s1940_s17 = sand.u32 1, %s1359_s19  }
  0x65   : > { %s941_s1 = sshll.u32 %s1940_s17, 3  ;;  %s942_s5 = sshll.u32 %s1700_s21, 1 }
  0x66   : > { %s1986_s12 = sld [smem:[#allocation37_spill]]  ;;  %s338_s13 = scalar_lea.vmem [#allocation10], %s939_s9 }
  0x67   : > { %s1719_s4 = scalar_lea.vmem [#allocation11], %s941_s1  ;;  %s1721_s14 = scalar_lea.vmem [#allocation12], %s942_s5 }
  0x68   : > { %s1987_s7 = sld [smem:[#allocation23_spill]] }
  0x6a   : > { %p389_p7 = scmp.lt.s32.totalorder %s1985_s28, 1 }
  0x6c   : > { %s2025_s28 = smov (!%p389_p7, %s1985_s28), 1 }
  0x6d   : > { %s391_s15 = scalar_lea.vmem %s1986_s12, %s2025_s28 }
  0x6e   : > { %p943_p10 = scmp.ne.s32.totalorder %s1987_s7, 0 }
  0x70   : > { %401 = sbr.rel (%p943_p10) target bundleno = 120 (0x78), region = 52 }
  0x75   : > { %vm402_vm0 = vcmask 254976   ;;  %v1411_v0 = vmov 0.0  }
  0x76   : > { %403 = vst.msk [vmem:[#allocation3] sm:$0x3] %vm402_vm0, %v1411_v0 }
  0x77   : > { %404 = vst.msk [vmem:[#allocation4] sm:$0x3] %vm402_vm0, %v1411_v0 }
  0x78 PF: > { %v409_v1 = vld [vmem:[%s328_s3 + $0x10] sm:$0xff]  ;;  %v410_v2 = vld [vmem:[%s328_s3 + $0x18] sm:$0xff]  ;;  %v407_v6 = vld [vmem:[%s328_s3] sm:$0xff]  ;;  %s1988_s24 = sld [smem:[#allocation24_spill]]  ;;  %vm417_vm1 = vcmask 261120   ;;  %s1412_s11 = smov 64  }
  0x79   : > { %v437_v3 = vld [vmem:[%s338_s13 + $0x10] sm:$0xff]  ;;  %v412_v4 = vpack.c.bf16 %v410_v2, %v409_v1  ;;  %v438_v5 = vld [vmem:[%s338_s13 + $0x18] sm:$0xff]  ;;  %v408_v7 = vld [vmem:[%s328_s3 + $0x8] sm:$0xff]  ;;  %s1413_s3 = smov 32   ;;  %s1414_s28 = smov 96   ;;  %vm496_vm2 = vcmask 254976  }
  0x7a   : > { %v440_v8 = vpack.c.bf16 %v438_v5, %v437_v3  ;;  %v435_v9 = vld [vmem:[%s338_s13] sm:$0xff]  ;;  %v436_v10 = vld [vmem:[%s338_s13 + $0x8] sm:$0xff]  ;;  %v411_v11 = vpack.c.bf16 %v408_v7, %v407_v6  ;;  %v405_v12 = vld [vmem:[%s318_s16] sm:$0xff] }
  0x7b   : > { %427 = vmatpush.bf16.msra.mxu0 %v412_v4  ;;  %v439_v13 = vpack.c.bf16 %v436_v10, %v435_v9  ;;  %v406_v15 = vpack.c.bf16 %v405_v12, %v405_v12  ;;  %v1110_v17 = vld [vmem:[%s391_s15] ss:$0 sm:$0xff] }
  0x7c   : > { %457 = vmatpush.bf16.msra.mxu1 %v440_v8  ;;  %520 = vmatpush.bf16.msra.mxu2 %v440_v8 }
  0x7d   : > { %v446_v14 = vld [vmem:[#allocation3] sm:$0x3]  ;;  %582 = vmatpush.bf16.msra.mxu3 %v440_v8 }
  0x7e   : > { %v447_v16 = vpack.c.bf16 %v446_v14, %v446_v14  ;;  %p441_p0 = scmp.eq.s32.totalorder %s1988_s24, 0  ;;  %v470_v26 = vld [vmem:[#allocation4] sm:$0x3] }
  0x7f   : > { %428 = vmatpush.bf16.msra.mxu0 %v411_v11 }
  0x80   : > { %458 = vmatpush.bf16.msra.mxu1 %v439_v13  ;;  %521 = vmatpush.bf16.msra.mxu2 %v439_v13  ;;  %s1736_s16 = scalar_select %p441_p0, 0, 3 }
  0x81   : > { %583 = vmatpush.bf16.msra.mxu3 %v439_v13  ;;  %s1757_s5 = scalar_select %p441_p0, 1, 2 }
  0x82   : > { %944 = vmatmul.msk.bf16.vlgmr.msra.gmra.mxu0 %vm417_vm1, %v406_v15  ;;  %s945_s20 = sshll.u32 %s1736_s16, 1 }
  0x83   : > { %644 = vmatpush.bf16.msrb.mxu0 %v440_v8  ;;  %946 = vmatmul.msk.bf16.vlgmr.msra.gmra.mxu1 %vm417_vm1, %v447_v16  ;;  %s444_s9 = scalar_lea.vmem [#allocation2], %s945_s20  ;;  %s503_s1 = scalar_lea.vmem %s1719_s4, %s945_s20 [#allocation11] }
  0x84   : > { %s947_s8 = sshll.u32 %s1757_s5, 1  ;;  %s1990_s20 = sld [smem:[#allocation23_spill]] }
  0x85   : > { %s507_s27 = scalar_lea.vmem [#allocation2], %s947_s8  ;;  %s565_s12 = scalar_lea.vmem %s1719_s4, %s947_s8 [#allocation11] }
  0x86   : > { %s1777_s15 = scalar_select %p441_p0, 2, 1 }
  0x87   : > { %645 = vmatpush.bf16.msrb.mxu0 %v439_v13  ;;  %s1797_s26 = scalar_select %p441_p0, 3, 0 }
  0x88   : > { %s949_s13 = sshll.u32 %s1777_s15, 1 }
  0x89   : > { %s569_s7 = scalar_lea.vmem [#allocation2], %s949_s13  ;;  %s627_s23 = scalar_lea.vmem %s1719_s4, %s949_s13 [#allocation11] }
  0x8a   : > { %s951_s10 = sshll.u32 %s1797_s26, 1  ;;  %p953_p13 = scmp.ne.s32.totalorder %s1990_s20, 1 }
  0x8b   : > { %s631_s16 = scalar_lea.vmem [#allocation2], %s951_s10  ;;  %s689_s24 = scalar_lea.vmem %s1719_s4, %s951_s10 [#allocation11] }
  0xff   : > { %v430_v18 = vpop.f32.mrf.mxu0 }
 0x100   : > { %v431_v19 = vadd.f32 %v1110_v17, %v430_v18  ;;  %v460_v20 = vpop.f32.mrf.mxu1 }
 0x102   : > { %434 = vst [vmem:[#allocation2] sm:$0xff] %v431_v19 }
 0x107   : > { %v432_v21 = vpop.f32.mrf.mxu0 }
 0x108   : > { %v462_v22 = vpop.f32.mrf.mxu1 }
 0x109   : > { %v445_v23 = vld [vmem:[%s444_s9] sm:$0x3] }
 0x10a   : > { %v464_v24 = vadd.f32 %v460_v20, %v445_v23  ;;  %v508_v45 = vld [vmem:[%s507_s27] sm:$0x3] }
 0x10b   : > { %v570_v4 = vld [vmem:[%s569_s7] sm:$0x3] }
 0x10c   : > { %1111 = vtanh.f32 %v464_v24  ;;  %v465_v27 = vmul.f32 0.5, %v464_v24 }
 0x10e   : > { %1113 = vtanh.f32 %v465_v27  ;;  %v632_v27 = vld [vmem:[%s631_s16] sm:$0x3] }
 0x112   : > { %v1112_v25 = vpop.eup %1111 }
 0x113   : > { %477 = vrot.lane.b32.xlu0 %v1112_v25, %s1412_s11 }
 0x114   : > { %v1114_v28 = vpop.eup %1113 }
 0x115   : > { %v467_v29 = vmul.f32 0.5, %v1114_v28 }
 0x117   : > { %v468_v30 = vadd.f32 0.5, %v467_v29 }
 0x11b   : > { %472 = vrot.lane.b32.xlu0 %v470_v26, %s1413_s3 }
 0x185   : > { %v478_v31 = vpop.permute.xlu0 %477 }
 0x186   : > { %v480_v32 = vmul.f32 %v478_v31, %v468_v30 }
 0x188   : > { %482 = vrot.lane.b32.xlu1 %v480_v32, %s1413_s3 }
 0x18d   : > { %v473_v33 = vpop.permute.xlu0 %472 }
 0x18e   : > { %v475_v34 = vmul.f32 %v473_v33, %v468_v30 }
 0x1fa   : > { %v483_v35 = vpop.permute.xlu1 %482 }
 0x1fb   : > { %v485_v36 = vadd.f32 %v483_v35, %v475_v34 }
 0x1fd   : > { %1115 = vtanh.f32 %v485_v36 }
 0x203   : > { %v1116_v37 = vpop.eup %1115 }
 0x204   : > { %488 = vrot.lane.b32.xlu1 %v1116_v37, %s1412_s11 }
 0x276   : > { %v489_v38 = vpop.permute.xlu1 %488 }
 0x277   : > { %v491_v39 = vmul.f32 %v489_v38, %v468_v30 }
 0x279   : > { %499 = vrot.lane.b32.xlu2 %v491_v39, %s1413_s3 }
 0x281   : > { %493 = vrot.lane.b32.xlu2 %v485_v36, %s1414_s28 }
 0x2d3   : > { %v500_v40 = vpop.permute.xlu2 %499 }
 0x2d4   : > { %502 = vst.msk [vmem:[#allocation3] sm:$0x3] %vm496_vm2, %v500_v40 }
 0x2d5   : > { %504 = vst.msk [vmem:[%s503_s1] sm:$0x3] %vm496_vm2, %v500_v40 }
 0x2db   : > { %v494_v41 = vpop.permute.xlu2 %493  ;;  %v509_v42 = vld [vmem:[#allocation3] sm:$0x3] }
 0x2dc   : > { %497 = vst.msk [vmem:[#allocation4] sm:$0x3] %vm496_vm2, %v494_v41  ;;  %v510_v43 = vpack.c.bf16 %v509_v42, %v509_v42 }
 0x2de   : > { %948 = vmatmul.msk.bf16.vlgmr.msra.gmra.mxu2 %vm417_vm1, %v510_v43 }
 0x2e3   : > { %v533_v44 = vld [vmem:[#allocation4] sm:$0x3] }
 0x2e4   : > { %535 = vrot.lane.b32.xlu1 %v533_v44, %s1413_s3 }
 0x356   : > { %v536_v56 = vpop.permute.xlu1 %535 }
 0x361   : > { %v523_v46 = vpop.f32.mrf.mxu2 }
 0x362   : > { %v527_v47 = vadd.f32 %v523_v46, %v508_v45 }
 0x364   : > { %1117 = vtanh.f32 %v527_v47  ;;  %v528_v50 = vmul.f32 0.5, %v527_v47 }
 0x366   : > { %1119 = vtanh.f32 %v528_v50 }
 0x369   : > { %v525_v48 = vpop.f32.mrf.mxu2 }
 0x36a   : > { %v1118_v49 = vpop.eup %1117 }
 0x36b   : > { %540 = vrot.lane.b32.xlu0 %v1118_v49, %s1412_s11 }
 0x36c   : > { %v1120_v51 = vpop.eup %1119 }
 0x36d   : > { %v530_v52 = vmul.f32 0.5, %v1120_v51 }
 0x36f   : > { %v531_v53 = vadd.f32 0.5, %v530_v52 }
 0x371   : > { %v538_v57 = vmul.f32 %v536_v56, %v531_v53 }
 0x3dd   : > { %v541_v54 = vpop.permute.xlu0 %540 }
 0x3de   : > { %v543_v55 = vmul.f32 %v541_v54, %v531_v53 }
 0x3e0   : > { %545 = vrot.lane.b32.xlu2 %v543_v55, %s1413_s3 }
 0x43a   : > { %v546_v58 = vpop.permute.xlu2 %545 }
 0x43b   : > { %v548_v59 = vadd.f32 %v546_v58, %v538_v57 }
 0x43d   : > { %1121 = vtanh.f32 %v548_v59  ;;  %556 = vrot.lane.b32.xlu2 %v548_v59, %s1414_s28 }
 0x443   : > { %v1122_v60 = vpop.eup %1121 }
 0x444   : > { %551 = vrot.lane.b32.xlu0 %v1122_v60, %s1412_s11 }
 0x497   : > { %v557_v61 = vpop.permute.xlu2 %556 }
 0x498   : > { %559 = vst.msk [vmem:[#allocation4] sm:$0x3] %vm496_vm2, %v557_v61 }
 0x49f   : > { %v595_v0 = vld [vmem:[#allocation4] sm:$0x3] }
 0x4b6   : > { %v552_v62 = vpop.permute.xlu0 %551 }
 0x4b7   : > { %v554_v63 = vmul.f32 %v552_v62, %v531_v53 }
 0x4b9   : > { %561 = vrot.lane.b32.xlu1 %v554_v63, %s1413_s3 }
 0x4c1   : > { %597 = vrot.lane.b32.xlu1 %v595_v0, %s1413_s3 }
 0x52b   : > { %v562_v1 = vpop.permute.xlu1 %561 }
 0x52c   : > { %564 = vst.msk [vmem:[#allocation3] sm:$0x3] %vm496_vm2, %v562_v1 }
 0x52d   : > { %566 = vst.msk [vmem:[%s565_s12] sm:$0x3] %vm496_vm2, %v562_v1 }
 0x533   : > { %v571_v2 = vld [vmem:[#allocation3] sm:$0x3]  ;;  %v598_v15 = vpop.permute.xlu1 %597 }
 0x534   : > { %v572_v3 = vpack.c.bf16 %v571_v2, %v571_v2 }
 0x536   : > { %950 = vmatmul.msk.bf16.vlgmr.msra.gmra.mxu3 %vm417_vm1, %v572_v3 }
 0x5b9   : > { %v585_v5 = vpop.f32.mrf.mxu3 }
 0x5ba   : > { %v589_v6 = vadd.f32 %v585_v5, %v570_v4 }
 0x5bc   : > { %1123 = vtanh.f32 %v589_v6  ;;  %v590_v9 = vmul.f32 0.5, %v589_v6 }
 0x5be   : > { %1125 = vtanh.f32 %v590_v9 }
 0x5c1   : > { %v587_v7 = vpop.f32.mrf.mxu3 }
 0x5c2   : > { %v1124_v8 = vpop.eup %1123 }
 0x5c3   : > { %602 = vrot.lane.b32.xlu0 %v1124_v8, %s1412_s11 }
 0x5c4   : > { %v1126_v10 = vpop.eup %1125 }
 0x5c5   : > { %v592_v11 = vmul.f32 0.5, %v1126_v10 }
 0x5c7   : > { %v593_v12 = vadd.f32 0.5, %v592_v11 }
 0x5c9   : > { %v600_v16 = vmul.f32 %v598_v15, %v593_v12 }
 0x635   : > { %v603_v13 = vpop.permute.xlu0 %602 }
 0x636   : > { %v605_v14 = vmul.f32 %v603_v13, %v593_v12 }
 0x638   : > { %607 = vrot.lane.b32.xlu2 %v605_v14, %s1413_s3 }
 0x692   : > { %v608_v17 = vpop.permute.xlu2 %607 }
 0x693   : > { %v610_v18 = vadd.f32 %v608_v17, %v600_v16 }
 0x695   : > { %1127 = vtanh.f32 %v610_v18  ;;  %618 = vrot.lane.b32.xlu2 %v610_v18, %s1414_s28 }
 0x69b   : > { %v1128_v19 = vpop.eup %1127 }
 0x69c   : > { %613 = vrot.lane.b32.xlu0 %v1128_v19, %s1412_s11 }
 0x6ef   : > { %v619_v20 = vpop.permute.xlu2 %618 }
 0x6f0   : > { %621 = vst.msk [vmem:[#allocation4] sm:$0x3] %vm496_vm2, %v619_v20 }
 0x6f7   : > { %v657_v23 = vld [vmem:[#allocation4] sm:$0x3] }
 0x70e   : > { %v614_v21 = vpop.permute.xlu0 %613 }
 0x70f   : > { %v616_v22 = vmul.f32 %v614_v21, %v593_v12 }
 0x711   : > { %623 = vrot.lane.b32.xlu1 %v616_v22, %s1413_s3 }
 0x719   : > { %659 = vrot.lane.b32.xlu1 %v657_v23, %s1413_s3 }
 0x783   : > { %v624_v24 = vpop.permute.xlu1 %623 }
 0x784   : > { %626 = vst.msk [vmem:[#allocation3] sm:$0x3] %vm496_vm2, %v624_v24 }
 0x785   : > { %628 = vst.msk [vmem:[%s627_s23] sm:$0x3] %vm496_vm2, %v624_v24 }
 0x78b   : > { %v633_v25 = vld [vmem:[#allocation3] sm:$0x3]  ;;  %v660_v38 = vpop.permute.xlu1 %659 }
 0x78c   : > { %v634_v26 = vpack.c.bf16 %v633_v25, %v633_v25 }
 0x78e   : > { %952 = vmatmul.msk.bf16.vlgmr.msrb.gmra.mxu0 %vm417_vm1, %v634_v26 }
 0x80b   : > { %v647_v28 = vpop.f32.mrf.mxu0 }
 0x80c   : > { %v651_v29 = vadd.f32 %v647_v28, %v632_v27 }
 0x80e   : > { %1129 = vtanh.f32 %v651_v29  ;;  %v652_v32 = vmul.f32 0.5, %v651_v29 }
 0x810   : > { %1131 = vtanh.f32 %v652_v32 }
 0x813   : > { %v649_v30 = vpop.f32.mrf.mxu0 }
 0x814   : > { %v1130_v31 = vpop.eup %1129 }
 0x815   : > { %664 = vrot.lane.b32.xlu0 %v1130_v31, %s1412_s11 }
 0x816   : > { %v1132_v33 = vpop.eup %1131 }
 0x817   : > { %v654_v34 = vmul.f32 0.5, %v1132_v33 }
 0x819   : > { %v655_v35 = vadd.f32 0.5, %v654_v34 }
 0x81b   : > { %v662_v39 = vmul.f32 %v660_v38, %v655_v35 }
 0x887   : > { %v665_v36 = vpop.permute.xlu0 %664 }
 0x888   : > { %v667_v37 = vmul.f32 %v665_v36, %v655_v35 }
 0x88a   : > { %669 = vrot.lane.b32.xlu2 %v667_v37, %s1413_s3 }
 0x8e4   : > { %v670_v40 = vpop.permute.xlu2 %669 }
 0x8e5   : > { %v672_v41 = vadd.f32 %v670_v40, %v662_v39 }
 0x8e7   : > { %1133 = vtanh.f32 %v672_v41  ;;  %680 = vrot.lane.b32.xlu1 %v672_v41, %s1414_s28 }
 0x8ed   : > { %v1134_v42 = vpop.eup %1133 }
 0x8ee   : > { %675 = vrot.lane.b32.xlu0 %v1134_v42, %s1412_s11 }
 0x959   : > { %v681_v43 = vpop.permute.xlu1 %680 }
 0x95a   : > { %683 = vst.msk [vmem:[#allocation4] sm:$0x3] %vm496_vm2, %v681_v43 }
 0x960   : > { %v676_v44 = vpop.permute.xlu0 %675 }
 0x961   : > { %v678_v45 = vmul.f32 %v676_v44, %v655_v35 }
 0x963   : > { %685 = vrot.lane.b32.xlu2 %v678_v45, %s1413_s3 }
 0x9bb   : > { %694 = sbr.rel (%p953_p13) target bundleno = 2503 (0x9c7), region = 56 }
 0x9bd   : > { %v686_v46 = vpop.permute.xlu2 %685 }
 0x9be   : > { %688 = vst.msk [vmem:[#allocation3] sm:$0x3] %vm496_vm2, %v686_v46 }
 0x9bf   : > { %690 = vst.msk [vmem:[%s689_s24] sm:$0x3] %vm496_vm2, %v686_v46 }
 0x9c5   : > { %v695_v47 = vld [vmem:[#allocation3] sm:$0x3] }
 0x9c6   : > { %696 = vst.msk [vmem:[%s1721_s14] sm:$0x3] %vm496_vm2, %v695_v47 }
 0x9c7 PF: > { %s1991_s9 = sld [smem:[#allocation24_spill]]  ;;  %s722_s27 = sshll.u32 %s1719_s4, 4  ;;  %s723_s27 = int_to_ptr.vmem [resolvable:$true] %s722_s27 }
 0x9c8   : > { %s1992_s11 = sld [smem:[#allocation23_spill]]  ;;  %s736_s24 = sshll.u32 %s1721_s14, 4  ;;  %s1829_s24 = int_to_ptr.vmem [resolvable:$true] %s736_s24 }
 0x9c9   : > { %s1993_s23 = sld [smem:[#allocation39_spill]]  ;;  %s1996_s4 = sand.u32 1, %s1359_s19  }
 0x9ca   : > { %s1995_s0 = sld [smem:[#allocation38_spill]] }
 0x9cd   : > { %s710_s3 = ssub.s32 1, %s1991_s9  ;;  %s956_s8 = sshll.u32 %s1991_s9, 1 }
 0x9ce   : > { %s711_s28 = smul.u32 %s1992_s11, %s710_s3  ;;  %s712_s1 = ssub.s32 1, %s1992_s11 }
 0x9cf   : > { %s713_s5 = smul.u32 %s1991_s9, %s712_s1  ;;  %s1994_s10 = smov %s1993_s23 }
 0x9d0   : > { %s734_s26 = scalar_lea.hbm %s1993_s23, %s956_s8  ;;  %s698_s9 = scalar_lea.sflag [#allocation7], %s1996_s4 }
 0x9d1   : > { %s714_s12 = sadd.s32 %s713_s5, %s711_s28  ;;  %s738_s3 = sshll.u32 %s734_s26, 4  ;;  %s1831_s3 = int_to_ptr.hbm [resolvable:$true] %s738_s3 }
 0x9d2   : > { %s718_s15 = sadd.s32 %s956_s8, %s714_s12  ;;  %s1245_s17 = scalar_lea.hbm %s1995_s0, 32 }
 0x9d3   : > { %s957_s16 = sshll.u32 %s718_s15, 3 }
 0x9d4   : > { %s720_s25 = scalar_lea.hbm %s1995_s0, %s957_s16 }
 0x9d5   : > { %s724_s11 = sshll.u32 %s720_s25, 4  ;;  %s725_s11 = int_to_ptr.hbm [resolvable:$true] %s724_s11 }
 0x9d6   : > { %s1239_s28 = sshra.s32 %s725_s11, 4  ;;  %s1240_s28 = int_to_ptr.hbm [resolvable:$true] %s1239_s28 }
 0x9d7   : > { %s1241_s1 = scalar_lea.hbm %s1240_s28, 8  ;;  %p1246_p8 = scmp.lt.s32.totalorder %s1240_s28, %s1995_s0 }
 0x9d8   : > { %p1242_p5 = scmp.ne.s32.totalorder %s1240_s28, %s1241_s1  ;;  %p1247_p11 = scmp.lt.s32.totalorder %s1245_s17, %s1241_s1 }
 0x9da   : > { %p1243_p1 = pnand %p1242_p5, %p1642_p2  ;;  %p1248_p4 = por %p1247_p11, %p1246_p8 }
 0x9dc   : > { %p1244_p6 = pneg %p1243_p1 }
 0x9de   : > { %p1249_p3 = pnand %p1248_p4, %p1244_p6 }
 0x9e0   : > { %1252 = shalt.err (!%p1249_p3)
}
 0x9e1   : > { %969 = dma.vmem_to_hbm [thread:$0]  (%p1642_p2), %s723_s27, 128, %s725_s11, %s698_s9  }
 0x9e2   : > { %s703_s25 = scalar_lea.sflag [#allocation13], %s1700_s21  ;;  %s1267_s15 = sshra.s32 %s1831_s3, 4  ;;  %s1268_s15 = int_to_ptr.hbm [resolvable:$true] %s1267_s15 }
 0x9e3   : > { %s1269_s13 = scalar_lea.hbm %s1268_s15, 2  ;;  %s1273_s26 = scalar_lea.hbm %s1994_s10, 4 }
 0x9e4   : > { %p1270_p7 = scmp.ne.s32.totalorder %s1268_s15, %s1269_s13  ;;  %p1274_p13 = scmp.lt.s32.totalorder %s1268_s15, %s1994_s10 }
 0x9e5   : > { %p1275_p5 = scmp.lt.s32.totalorder %s1273_s26, %s1269_s13 }
 0x9e6   : > { %p1271_p10 = pnand %p1270_p7, %p1655_p12 }
 0x9e7   : > { %p1276_p1 = por %p1275_p5, %p1274_p13 }
 0x9e8   : > { %p1272_p0 = pneg %p1271_p10 }
 0x9ea   : > { %p1277_p6 = pnand %p1276_p1, %p1272_p0 }
 0x9ec   : > { %1280 = shalt.err (!%p1277_p6)
}
 0x9ed   : > { %970 = dma.vmem_to_hbm [thread:$0]  (%p1655_p12), %s1829_s24, 32, %s1831_s3, %s703_s25  }
 0x9ee PF: > { %p991_p2 = scmp.ge.s32.totalorder %s1407_s6, 2  ;;  %s750_s30 = sand.u32 1, %s1355_s18  }
 0x9ef   : > { %s751_s21 = scalar_lea.sflag [#allocation7], %s750_s30 }
 0x9f0   : > { %p984_p8 = pnand %p991_p2, %p1648_p9 }
 0x9f2   : > { %p985_p11 = pneg %p984_p8 }
 0x9f4   : > { %1346 = dma.done.wait (%p985_p11), %s751_s21, 128  }
 0x9f5   : > { %1348 = vsyncadd (%p985_p11), %s751_s21, 4294967168  ;;  %s1997_s27 = sld [smem:[#allocation19_spill]] }
 0x9f6   : > { %s1998_s11 = sld [smem:[#allocation27_spill]] }
 0x9fb   : > { %s760_s4 = sand.u32 1, %s1997_s27  }
 0x9fc   : > { %p1999_p4 = scmp.ne.s32.totalorder %s1998_s11, 0  ;;  %s761_s29 = scalar_lea.sflag [#allocation13], %s760_s4 }
 0x9fe   : > { %p987_p3 = pnand %p991_p2, %p1999_p4 }
 0xa00   : > { %p988_p7 = pneg %p987_p3 }
 0xa02   : > { %1350 = dma.done.wait (%p988_p7), %s761_s29, 32  }
 0xa03   : > { %1352 = vsyncadd (%p988_p7), %s761_s29, 4294967264  ;;  %s28_s6 = sadd.s32 1, %s1407_s6   ;;  %s2001_s2 = sld [smem:[#allocation18_spill]] }
 0xa04   : > { %p1867_p12 = scmp.ge.s32.totalorder %s28_s6, 6   ;;  %s2002_s20 = sld [smem:[#allocation33_spill]] }
 0xa05   : > { %s2003_s3 = sld [smem:[#allocation20_spill]]  ;;  %s2013_s18 = smov %s1359_s19 }
 0xa06   : > { %s2004_s23 = sld [smem:[#allocation31_spill]]  ;;  %s2015_s21 = smov %s1371_s22 }
 0xa07   : > { %s2005_s9 = sld [smem:[#allocation21_spill]] }
 0xa08   : > { %s2006_s25 = sld [smem:[#allocation22_spill]] }
 0xa09   : > { %s2007_s26 = sld [smem:[#allocation32_spill]]  ;;  %s2014_s19 = smov %s2001_s2 }
 0xa0a   : > { %s2008_s27 = sld [smem:[#allocation25_spill]]  ;;  %27 = sbr.rel (!%p1867_p12) target bundleno = 21 (0x15), region = 141 }
 0xa0b   : > { %s2009_s28 = sld [smem:[#allocation26_spill]]  ;;  %s2016_s22 = smov %s2003_s3 }
 0xa0c   : > { %s2010_s29 = sld [smem:[#allocation29_spill]] }
 0xa0d   : > { %s2011_s30 = sld [smem:[#allocation30_spill]]  ;;  %s2017_s24 = smov %s2005_s9 }
 0xa0f   :  { %767 = vsyncpa [#allocation6], 1 }
 0xa10   :  { %769 = vsyncpa [#allocation6 + $0x1], 1 }
 0xa11   :  { %770 = vsyncpa [#allocation9], 1 }
 0xa12   :  { %772 = vsyncpa [#allocation9 + $0x1], 1 }
 0xa13   :  { %773 = vsyncpa [#allocation7], 1 }
 0xa14   :  { %775 = vsyncpa [#allocation7 + $0x1], 1 }
 0xa15   :  { %776 = vsyncpa [#allocation13], 1 }
 0xa16   :  { %778 = vsyncpa [#allocation13 + $0x1], 1 }

</bundles_post_ra>
